<compile_context>
chip_gen: v7x
topology: tpu7x:2x2x1
jax: 0.10.0
libtpu: 0.0.40
codegen_flags: <defaults>
</compile_context>

<pallas_src>
import functools

import jax
import jax.numpy as jnp
from jax.experimental import pallas as pl
from jax.experimental.pallas import tpu as pltpu

BN_EPS = 1e-5
LANE = 128


def _round_up(x, m):
    return ((x + m - 1) // m) * m


def swiglu_kernel(x_ref, w1_ref, b1_ref, w2_ref, b2_ref, o_ref):
    hp = w2_ref.shape[0]  # padded hidden width (static)

    # Fused gate/value projection: one wide MXU matmul (bf16 in, f32 accumulate).
    gh = jnp.dot(x_ref[...], w1_ref[...], preferred_element_type=jnp.float32)
    gh = gh + b1_ref[...]                       # f32 bias add (VPU)

    # Lane-tile-aligned static split (hp is a multiple of 128) -> no data movement.
    g = gh[:, :hp]
    h = gh[:, hp:]

    # SiLU(g) * h in f32: sigmoid goes to the EUP, multiplies to the VPU.
    y = (g * jax.nn.sigmoid(g)) * h

    # drop1 + BatchNorm already handled (identity / folded into w2,b2).

    # fc2 on the MXU (bf16 in, f32 accumulate) + folded bias.
    out = jnp.dot(y.astype(w2_ref.dtype), w2_ref[...],
                  preferred_element_type=jnp.float32) + b2_ref[...]

    # drop2: identity in eval mode.
    o_ref[...] = out.astype(o_ref.dtype)


@functools.partial(jax.jit, static_argnames=("block_n",))
def swiglu_forward(x, params, block_n=256):
    n, in_f = x.shape
    hid_f = params["w1g"].shape[1]
    out_f = params["w2"].shape[1]

    # ---- Fold BatchNorm1d (eval, running stats) into fc2 (exact algebra, f32) ----
    s = params["gamma"] * jax.lax.rsqrt(params["var"] + BN_EPS)   # [1, H]
    shift = params["beta"] - params["mean"] * s                   # [1, H]
    w2f = params["w2"] * s.reshape(hid_f, 1)                      # [H, O]
    b2f = params["b2"] + shift @ params["w2"]                     # [1, O]

    # ---- Pad feature dims to lane multiples (128) and batch to block_n ----
    ip = _round_up(in_f, LANE)
    hp = _round_up(hid_f, LANE)
    op = _round_up(out_f, LANE)
    n_pad = _round_up(n, block_n)

    xp = jnp.pad(x, ((0, n_pad - n), (0, ip - in_f))).astype(jnp.bfloat16)

    w1g = jnp.pad(params["w1g"], ((0, ip - in_f), (0, hp - hid_f)))
    w1x = jnp.pad(params["w1x"], ((0, ip - in_f), (0, hp - hid_f)))
    w1 = jnp.concatenate([w1g, w1x], axis=1).astype(jnp.bfloat16)     # [Ip, 2*Hp]
    b1 = jnp.concatenate(
        [jnp.pad(params["b1g"], ((0, 0), (0, hp - hid_f))),
         jnp.pad(params["b1x"], ((0, 0), (0, hp - hid_f)))], axis=1)  # [1, 2*Hp] f32

    w2p = jnp.pad(w2f, ((0, hp - hid_f), (0, op - out_f))).astype(jnp.bfloat16)
    b2p = jnp.pad(b2f, ((0, 0), (0, op - out_f)))                     # [1, Op] f32

    grid = (n_pad // block_n,)

    cost = pl.CostEstimate(
        flops=2 * n_pad * ip * (2 * hp) + 2 * n_pad * hp * op,
        transcendentals=n_pad * hp,
        bytes_accessed=(n_pad * ip * 2 + ip * 2 * hp * 2 + 2 * hp * 4
                        + hp * op * 2 + op * 4 + n_pad * op * 4),
    )

    out_padded = pl.pallas_call(
        swiglu_kernel,
        out_shape=jax.ShapeDtypeStruct((n_pad, op), jnp.float32),
        grid_spec=pltpu.PrefetchScalarGridSpec(
            num_scalar_prefetch=0,
            grid=grid,
            in_specs=[
                pl.BlockSpec((block_n, ip), lambda i: (i, 0)),   # x tile
                pl.BlockSpec((ip, 2 * hp), lambda i: (0, 0)),    # fused W1 (resident)
                pl.BlockSpec((1, 2 * hp), lambda i: (0, 0)),     # fused b1
                pl.BlockSpec((hp, op), lambda i: (0, 0)),        # BN-folded W2
                pl.BlockSpec((1, op), lambda i: (0, 0)),         # BN-folded b2
            ],
            out_specs=pl.BlockSpec((block_n, op), lambda i: (i, 0)),
        ),
        compiler_params=pltpu.CompilerParams(
            dimension_semantics=("parallel",),
            # Raise scoped VMEM above the 16/32 MiB defaults but stay well
            # under v7x's 64 MiB physical per-TC budget.
            vmem_limit_bytes=48 * 1024 * 1024,
        ),
        cost_estimate=cost,
    )(xp, w1, b1, w2p, b2p)

    return out_padded[:n, :out_f]


def init_params(key, in_f, hid_f, out_f):
    """Deterministic synthetic parameters (PyTorch Linear weight is [out, in];
    we store the transpose [in, out] for direct x @ W matmuls)."""
    ks = jax.random.split(key, 6)
    scale1 = 1.0 / jnp.sqrt(in_f)
    scale2 = 1.0 / jnp.sqrt(hid_f)
    return {
        "w1g": jax.random.uniform(ks[0], (in_f, hid_f), jnp.float32, -scale1, scale1),
        "b1g": jax.random.uniform(ks[1], (1, hid_f), jnp.float32, -scale1, scale1),
        "w1x": jax.random.uniform(ks[2], (in_f, hid_f), jnp.float32, -scale1, scale1),
        "b1x": jax.random.uniform(ks[3], (1, hid_f), jnp.float32, -scale1, scale1),
        # BatchNorm1d default init + running stats (eval mode)
        "gamma": jnp.ones((1, hid_f), jnp.float32),
        "beta": jnp.zeros((1, hid_f), jnp.float32),
        "mean": jnp.zeros((1, hid_f), jnp.float32),
        "var": jnp.ones((1, hid_f), jnp.float32),
        "w2": jax.random.uniform(ks[4], (hid_f, out_f), jnp.float32, -scale2, scale2),
        "b2": jax.random.uniform(ks[5], (1, out_f), jnp.float32, -scale2, scale2),
    }


def reference_forward(x, p):
    """Pure-JAX f32 reference matching the PyTorch eval-mode forward."""
    g = x @ p["w1g"] + p["b1g"]
    h = x @ p["w1x"] + p["b1x"]
    y = jax.nn.silu(g) * h
    y = (y - p["mean"]) / jnp.sqrt(p["var"] + BN_EPS) * p["gamma"] + p["beta"]
    return y @ p["w2"] + p["b2"]


if __name__ == "__main__":
    IN_F, HID_F, OUT_F = 32, 64, 16
    BATCH = 512          # -> 2 grid steps at block_n=256 (both v7x TensorCores busy)
    BLOCK_N = 256

    key = jax.random.PRNGKey(0)
    kx, kp = jax.random.split(key)
    x = jax.random.normal(kx, (BATCH, IN_F), jnp.float32)
    params = init_params(kp, IN_F, HID_F, OUT_F)

    out = swiglu_forward(x, params, block_n=BLOCK_N)
    out = jax.block_until_ready(out)

    ref = reference_forward(x, params)
    assert out.shape == (BATCH, OUT_F)
    # Looser tolerance than pure-f32 because matmul operands are bf16 on the MXU
    # (f32 accumulation); BN fold itself is exact algebra.
    assert jnp.allclose(out, ref, atol=3e-2, rtol=3e-2), "mismatch vs JAX reference"

    print("KERNEL_OK")
</pallas_src>

<mosaic_0001>
module attributes {stable_mosaic.version = 11 : i64} {
  func.func @swiglu_kernel(%arg0: i32, %arg1: memref<256x128xbf16, #tpu.memory_space<vmem>>, %arg2: memref<128x256xbf16, #tpu.memory_space<vmem>>, %arg3: memref<1x256xf32, #tpu.memory_space<vmem>>, %arg4: memref<128x128xbf16, #tpu.memory_space<vmem>>, %arg5: memref<1x128xf32, #tpu.memory_space<vmem>>, %arg6: memref<256x128xf32, #tpu.memory_space<vmem>>) attributes {dimension_semantics = [#tpu.dimension_semantics<parallel>], iteration_bounds = array<i64: 2>, scalar_prefetch = 0 : i64, scratch_operands = 0 : i64, tpu.core_type = #tpu.core_type<tc>, window_params = [{transform_indices = @transform_0, window_bounds = array<i64: 256, 128>}, {pipeline_mode = #tpu.pipeline_mode<synchronous>, transform_indices = @transform_1, window_bounds = array<i64: 128, 256>}, {pipeline_mode = #tpu.pipeline_mode<synchronous>, transform_indices = @transform_2, window_bounds = array<i64: 1, 256>}, {pipeline_mode = #tpu.pipeline_mode<synchronous>, transform_indices = @transform_3, window_bounds = array<i64: 128, 128>}, {pipeline_mode = #tpu.pipeline_mode<synchronous>, transform_indices = @transform_4, window_bounds = array<i64: 1, 128>}, {transform_indices = @transform_5, window_bounds = array<i64: 256, 128>}]} {
    %c0 = arith.constant 0 : index
    %c0_0 = arith.constant 0 : index
    %0 = vector.load %arg1[%c0, %c0_0] : memref<256x128xbf16, #tpu.memory_space<vmem>>, vector<256x128xbf16>
    %c0_1 = arith.constant 0 : index
    %c0_2 = arith.constant 0 : index
    %1 = vector.load %arg2[%c0_1, %c0_2] : memref<128x256xbf16, #tpu.memory_space<vmem>>, vector<128x256xbf16>
    %cst = arith.constant dense<0.000000e+00> : vector<256x256xf32>
    %2 = tpu.matmul %0, %1, %cst {dimension_numbers = #tpu.dot_dimension_numbers<[1], [0], [0], [1], [0, 0, 1, 1], [], []>} : vector<256x128xbf16>, vector<128x256xbf16>, vector<256x256xf32> -> vector<256x256xf32>
    %c0_3 = arith.constant 0 : index
    %c0_4 = arith.constant 0 : index
    %3 = vector.load %arg3[%c0_3, %c0_4] : memref<1x256xf32, #tpu.memory_space<vmem>>, vector<1x256xf32>
    %4 = vector.broadcast %3 : vector<1x256xf32> to vector<256x256xf32>
    %5 = arith.addf %2, %4 : vector<256x256xf32>
    %6 = vector.extract_strided_slice %5 {offsets = [0, 0], sizes = [256, 128], strides = [1, 1]} : vector<256x256xf32> to vector<256x128xf32>
    %7 = vector.extract_strided_slice %5 {offsets = [0, 128], sizes = [256, 128], strides = [1, 1]} : vector<256x256xf32> to vector<256x128xf32>
    %8 = arith.negf %6 : vector<256x128xf32>
    %9 = math.exp %8 : vector<256x128xf32>
    %cst_5 = arith.constant 1.000000e+00 : f32
    %10 = vector.broadcast %cst_5 : f32 to vector<256x128xf32>
    %11 = arith.addf %10, %9 : vector<256x128xf32>
    %12 = arith.divf %10, %11 : vector<256x128xf32>
    %13 = arith.mulf %6, %12 : vector<256x128xf32>
    %14 = arith.mulf %13, %7 : vector<256x128xf32>
    %15 = arith.truncf %14 : vector<256x128xf32> to vector<256x128xbf16>
    %c0_6 = arith.constant 0 : index
    %c0_7 = arith.constant 0 : index
    %16 = vector.load %arg4[%c0_6, %c0_7] : memref<128x128xbf16, #tpu.memory_space<vmem>>, vector<128x128xbf16>
    %cst_8 = arith.constant dense<0.000000e+00> : vector<256x128xf32>
    %17 = tpu.matmul %15, %16, %cst_8 {dimension_numbers = #tpu.dot_dimension_numbers<[1], [0], [0], [1], [0, 0, 1, 1], [], []>} : vector<256x128xbf16>, vector<128x128xbf16>, vector<256x128xf32> -> vector<256x128xf32>
    %c0_9 = arith.constant 0 : index
    %c0_10 = arith.constant 0 : index
    %18 = vector.load %arg5[%c0_9, %c0_10] : memref<1x128xf32, #tpu.memory_space<vmem>>, vector<1x128xf32>
    %19 = vector.broadcast %18 : vector<1x128xf32> to vector<256x128xf32>
    %20 = arith.addf %17, %19 : vector<256x128xf32>
    %c0_11 = arith.constant 0 : index
    %c0_12 = arith.constant 0 : index
    %21 = vector.load %arg6[%c0_11, %c0_12] : memref<256x128xf32, #tpu.memory_space<vmem>>, vector<256x128xf32>
    tpu.vector_store %arg6[%c0_11, %c0_12], %20 {strides = array<i32>} : memref<256x128xf32, #tpu.memory_space<vmem>>, vector<256x128xf32>,
    return
  }
  func.func @transform_0(%arg0: i32) -> (i32, i32) {
    %c0_i32 = arith.constant 0 : i32
    %c0_i32_0 = arith.constant 0 : i32
    return %arg0, %c0_i32 : i32, i32
  }
  func.func @transform_1(%arg0: i32) -> (i32, i32) {
    %c0_i32 = arith.constant 0 : i32
    %c0_i32_0 = arith.constant 0 : i32
    %c0_i32_1 = arith.constant 0 : i32
    return %c0_i32, %c0_i32_0 : i32, i32
  }
  func.func @transform_2(%arg0: i32) -> (i32, i32) {
    %c0_i32 = arith.constant 0 : i32
    %c0_i32_0 = arith.constant 0 : i32
    %c0_i32_1 = arith.constant 0 : i32
    return %c0_i32, %c0_i32_0 : i32, i32
  }
  func.func @transform_3(%arg0: i32) -> (i32, i32) {
    %c0_i32 = arith.constant 0 : i32
    %c0_i32_0 = arith.constant 0 : i32
    %c0_i32_1 = arith.constant 0 : i32
    return %c0_i32, %c0_i32_0 : i32, i32
  }
  func.func @transform_4(%arg0: i32) -> (i32, i32) {
    %c0_i32 = arith.constant 0 : i32
    %c0_i32_0 = arith.constant 0 : i32
    %c0_i32_1 = arith.constant 0 : i32
    return %c0_i32, %c0_i32_0 : i32, i32
  }
  func.func @transform_5(%arg0: i32) -> (i32, i32) {
    %c0_i32 = arith.constant 0 : i32
    %c0_i32_0 = arith.constant 0 : i32
    return %arg0, %c0_i32 : i32, i32
  }
}

</mosaic_0001>

<bundles_post_ra>
// kernel: swiglu_forward.1
= control target key start
LH: loop header
LB: loop body
LE: loop exit
PB: predicated region body
PF: predicated region fallthrough
CT: control target
= control target key end

     0   :  { %s1646_s18 = smov 0   ;;  %s2169_s0 = inlined_call_operand.vmem [shape: bf16[512,128], index: 0, kind: input, shape index: {}]   ;;  %s2170_s1 = inlined_call_operand.vmem [shape: bf16[128,256], index: 1, kind: input, shape index: {}]   ;;  %s2171_s2 = inlined_call_operand.vmem [shape: f32[1,256], index: 2, kind: input, shape index: {}]   ;;  %s2172_s3 = inlined_call_operand.vmem [shape: bf16[128,128], index: 3, kind: input, shape index: {}]   ;;  %s2173_s4 = inlined_call_operand.vmem [shape: f32[1,128], index: 4, kind: input, shape index: {}]   ;;  %s2174_s5 = inlined_call_operand.vmem [shape: f32[512,128], index: 5, kind: output, shape index: {}]  }
   0x1 LB: > { %s1250_s19 = sadd.s32 4294967295, %s1613_s18   ;;  %p1254_p0 = scmp.ge.s32.totalorder %s1613_s18, 1  ;;  %s1613_s18 = sphi %s1646_s18, %s15_s18  }
   0x2   : > { %p188_p1 = scmp.lt.s32.totalorder %s1613_s18, 3 }
   0x4   : > { %p189_p2 = pnand %p1254_p0, %p188_p1 }
   0x5   : > { %v1431_v0 = vld [vmem:[%s2170_s1 + $0x4] ss:$8 sps:$4 sm:$0xff] (!%p189_p2)   ;;  %s1255_s22 = sshll.u32 (!%p189_p2), %s1250_s19, 5  ;;  %v1433_v1 = vld [vmem:[%s2170_s1] ss:$8 sps:$4 sm:$0xff] (!%p189_p2)   ;;  %v1615_v2 = vmov (!%p189_p2), 0   ;;  %v279_v41 = vlaneseq (!%p189_p2) }
   0x6   : > { %192 = sbr.rel (%p189_p2) target bundleno = 609 (0x261), region = 40  ;;  %497 = vmatprep.mubr.bf16.mxu0 (!%p189_p2), %v1615_v2  ;;  %p217_p3 = scmp.lt.s32.totalorder (!%p189_p2), %s1255_s22, 63  ;;  %617 = vmatprep.mubr.bf16.mxu1 (!%p189_p2), %v1615_v2  ;;  %v1434_v3 = vld [vmem:[%s2170_s1 + $0x14] ss:$8 sps:$4 sm:$0xff] (!%p189_p2)   ;;  %v1436_v4 = vld [vmem:[%s2170_s1 + $0x10] ss:$8 sps:$4 sm:$0xff] (!%p189_p2)  }
   0x7   : > { %465 = vmatprep.subr.bf16.mxu0 (!%p189_p2), %v1431_v0  ;;  %1406 = vmatprep.subr.bf16.mxu1 (!%p189_p2), %v1431_v0  ;;  %v1437_v5 = vld [vmem:[%s2170_s1 + $0x24] ss:$8 sps:$4 sm:$0xff] (!%p189_p2)   ;;  %v1439_v6 = vld [vmem:[%s2170_s1 + $0x20] ss:$8 sps:$4 sm:$0xff] (!%p189_p2)   ;;  %v1440_v7 = vld [vmem:[%s2170_s1 + $0x34] ss:$8 sps:$4 sm:$0xff] (!%p189_p2)  }
   0x8   : > { %466 = vmatpush1.bf16.msra.mxu0 (!%p189_p2), %v1433_v1  ;;  %1414 = vmatpush1.bf16.msra.mxu1 (!%p189_p2), %v1433_v1  ;;  %v1442_v8 = vld [vmem:[%s2170_s1 + $0x30] ss:$8 sps:$4 sm:$0xff] (!%p189_p2)   ;;  %v1443_v9 = vld [vmem:[%s2170_s1 + $0x44] ss:$8 sps:$4 sm:$0xff] (!%p189_p2)   ;;  %v1445_v10 = vld [vmem:[%s2170_s1 + $0x40] ss:$8 sps:$4 sm:$0xff] (!%p189_p2)  }
   0x9   : > { %467 = vmatprep.subr.bf16.mxu0 (!%p189_p2), %v1434_v3  ;;  %1407 = vmatprep.subr.bf16.mxu1 (!%p189_p2), %v1434_v3  ;;  %v1446_v11 = vld [vmem:[%s2170_s1 + $0x54] ss:$8 sps:$4 sm:$0xff] (!%p189_p2)   ;;  %v1448_v12 = vld [vmem:[%s2170_s1 + $0x50] ss:$8 sps:$4 sm:$0xff] (!%p189_p2)   ;;  %v1449_v13 = vld [vmem:[%s2170_s1 + $0x64] ss:$8 sps:$4 sm:$0xff] (!%p189_p2)  }
   0xa   : > { %v1451_v14 = vld [vmem:[%s2170_s1 + $0x60] ss:$8 sps:$4 sm:$0xff] (!%p189_p2)   ;;  %v1452_v15 = vld [vmem:[%s2170_s1 + $0x74] ss:$8 sps:$4 sm:$0xff] (!%p189_p2)   ;;  %v1454_v16 = vld [vmem:[%s2170_s1 + $0x70] ss:$8 sps:$4 sm:$0xff] (!%p189_p2)  }
   0xb   : > { %v1471_v33 = vld [vmem:[%s2172_s3] sm:$0xff] (!%p189_p2)   ;;  %v1472_v34 = vld [vmem:[%s2172_s3 + $0x8] sm:$0xff] (!%p189_p2)   ;;  %v1473_v35 = vld [vmem:[%s2172_s3 + $0x10] sm:$0xff] (!%p189_p2)   ;;  %v1766_v42 = vshrl.u32 (!%p189_p2), %v279_v41, 7 }
   0xc   : > { %468 = vmatpush1.bf16.msra.mxu0 (!%p189_p2), %v1436_v4  ;;  %1415 = vmatpush1.bf16.msra.mxu1 (!%p189_p2), %v1436_v4  ;;  %v1474_v36 = vld [vmem:[%s2172_s3 + $0x18] sm:$0xff] (!%p189_p2)   ;;  %v1475_v37 = vld [vmem:[%s2172_s3 + $0x20] sm:$0xff] (!%p189_p2)   ;;  %v1476_v38 = vld [vmem:[%s2172_s3 + $0x28] sm:$0xff] (!%p189_p2)  }
   0xd   : > { %s2176_s22 = smov (!%p217_p3, %s1255_s22), 63  ;;  %469 = vmatprep.subr.bf16.mxu0 %v1437_v5  ;;  %1408 = vmatprep.subr.bf16.mxu1 %v1437_v5  ;;  %v1477_v39 = vld [vmem:[%s2172_s3 + $0x30] sm:$0xff]   ;;  %v1478_v40 = vld [vmem:[%s2172_s3 + $0x38] sm:$0xff]   ;;  %v281_v43 = vsub.s32 0, %v1766_v42  ;;  %v1772_v44 = vld [vmem:[%s2171_s2] sm:$0x3] }
   0xe   : > { %s1256_s6 = sshll.u32 %s2176_s22, 2  ;;  %s1258_s29 = sshll.u32 %s2176_s22, 3 }
   0xf   : > { %s1683_s13 = scalar_lea.vmem %s2169_s0, %s1256_s6  ;;  %v1775_v45 = vrot.slane %v1772_v44, %v281_v43  ;;  %s2100_s9 = scalar_lea.vmem %s2174_s5, %s1258_s29 }
  0x10   : > { %470 = vmatpush1.bf16.msra.mxu0 %v1439_v6  ;;  %1416 = vmatpush1.bf16.msra.mxu1 %v1439_v6  ;;  %v1455_v17 = vld [vmem:[%s1683_s13] sm:$0xff]   ;;  %v1456_v19 = vld [vmem:[%s1683_s13 + $0x8] sm:$0xff]   ;;  %v1457_v21 = vld [vmem:[%s1683_s13 + $0x10] sm:$0xff]  }
  0x11   : > { %471 = vmatprep.subr.bf16.mxu0 %v1440_v7  ;;  %1409 = vmatprep.subr.bf16.mxu1 %v1440_v7  ;;  %v1462_v18 = vld [vmem:[%s1683_s13 + $0x60] sm:$0xff]   ;;  %v1464_v20 = vld [vmem:[%s1683_s13 + $0x68] sm:$0xff]   ;;  %v1466_v22 = vld [vmem:[%s1683_s13 + $0x70] sm:$0xff]  }
  0x12   : > { %v1458_v23 = vld [vmem:[%s1683_s13 + $0x18] sm:$0xff]   ;;  %v1459_v25 = vld [vmem:[%s1683_s13 + $0x20] sm:$0xff]   ;;  %v1460_v26 = vld [vmem:[%s1683_s13 + $0x28] sm:$0xff]  }
  0x13   : > { %v1468_v24 = vld [vmem:[%s1683_s13 + $0x78] sm:$0xff]   ;;  %v1461_v27 = vld [vmem:[%s1683_s13 + $0x30] sm:$0xff]   ;;  %v1465_v29 = vld [vmem:[%s1683_s13 + $0x40] sm:$0xff]  }
  0x14   : > { %472 = vmatpush1.bf16.msra.mxu0 %v1442_v8  ;;  %1417 = vmatpush1.bf16.msra.mxu1 %v1442_v8  ;;  %v1463_v28 = vld [vmem:[%s1683_s13 + $0x38] sm:$0xff]   ;;  %v1467_v30 = vld [vmem:[%s1683_s13 + $0x48] sm:$0xff]   ;;  %v1469_v31 = vld [vmem:[%s1683_s13 + $0x50] sm:$0xff]  }
  0x15   : > { %473 = vmatprep.subr.bf16.mxu0 %v1443_v9  ;;  %1410 = vmatprep.subr.bf16.mxu1 %v1443_v9  ;;  %v1470_v32 = vld [vmem:[%s1683_s13 + $0x58] sm:$0xff]  }
  0x18   : > { %474 = vmatpush1.bf16.msra.mxu0 %v1445_v10  ;;  %1418 = vmatpush1.bf16.msra.mxu1 %v1445_v10 }
  0x19   : > { %475 = vmatprep.subr.bf16.mxu0 %v1446_v11  ;;  %1411 = vmatprep.subr.bf16.mxu1 %v1446_v11 }
  0x1c   : > { %476 = vmatpush1.bf16.msra.mxu0 %v1448_v12  ;;  %1419 = vmatpush1.bf16.msra.mxu1 %v1448_v12 }
  0x1d   : > { %477 = vmatprep.subr.bf16.mxu0 %v1449_v13  ;;  %1412 = vmatprep.subr.bf16.mxu1 %v1449_v13 }
  0x20   : > { %478 = vmatpush1.bf16.msra.mxu0 %v1451_v14  ;;  %1420 = vmatpush1.bf16.msra.mxu1 %v1451_v14 }
  0x21   : > { %479 = vmatprep.subr.bf16.mxu0 %v1452_v15  ;;  %1413 = vmatprep.subr.bf16.mxu1 %v1452_v15 }
  0x24   : > { %480 = vmatpush1.bf16.msra.mxu0 %v1454_v16  ;;  %1421 = vmatpush1.bf16.msra.mxu1 %v1454_v16 }
  0x25   : > { %1358 = vmatprep.subr.bf16.mxu1 %v1471_v33 }
  0x27   : > { %498 = vmatmul.mubr.bf16.vlgmr.msra.gmra.mrb[0].mxu0 %v1455_v17  ;;  %618 = vmatmul.mubr.bf16.vlgmr.msra.gmra.mrb[0].mxu1 %v1462_v18 }
  0x28   : > { %507 = vmatprep.mubr.bf16.mxu0 %v1615_v2  ;;  %627 = vmatprep.mubr.bf16.mxu1 %v1615_v2 }
  0x29   : > { %1359 = vmatpush3.bf16.msra.mxu1 %v1471_v33 }
  0x2a   : > { %1360 = vmatprep.subr.bf16.mxu1 %v1472_v34 }
  0x2d   : > { %1361 = vmatpush3.bf16.msra.mxu1 %v1472_v34  ;;  %v285_v34 = vsub.s32 1, %v1766_v42 }
  0x2e   : > { %1362 = vmatprep.subr.bf16.mxu1 %v1473_v35 }
  0x2f   : > { %508 = vmatmul.mubr.bf16.gmra.mrb[4].mxu0 %v1456_v19  ;;  %628 = vmatmul.mubr.bf16.gmra.mrb[4].mxu1 %v1464_v20  ;;  %v1851_v41 = vrot.slane %v1772_v44, %v285_v34 }
  0x30   : > { %517 = vmatprep.mubr.bf16.mxu0 %v1615_v2  ;;  %637 = vmatprep.mubr.bf16.mxu1 %v1615_v2 }
  0x31   : > { %1363 = vmatpush3.bf16.msra.mxu1 %v1473_v35 }
  0x32   : > { %1364 = vmatprep.subr.bf16.mxu1 %v1474_v36 }
  0x35   : > { %1365 = vmatpush3.bf16.msra.mxu1 %v1474_v36 }
  0x36   : > { %1366 = vmatprep.subr.bf16.mxu1 %v1475_v37 }
  0x37   : > { %518 = vmatmul.mubr.bf16.gmra.mrb[8].mxu0 %v1457_v21  ;;  %638 = vmatmul.mubr.bf16.gmra.mrb[8].mxu1 %v1466_v22 }
  0x38   : > { %527 = vmatprep.mubr.bf16.mxu0 %v1615_v2  ;;  %647 = vmatprep.mubr.bf16.mxu1 %v1615_v2 }
  0x39   : > { %1367 = vmatpush3.bf16.msra.mxu1 %v1475_v37 }
  0x3a   : > { %1368 = vmatprep.subr.bf16.mxu1 %v1476_v38 }
  0x3d   : > { %1369 = vmatpush3.bf16.msra.mxu1 %v1476_v38 }
  0x3e   : > { %1370 = vmatprep.subr.bf16.mxu1 %v1477_v39 }
  0x3f   : > { %528 = vmatmul.mubr.bf16.gmra.mrb[12].mxu0 %v1458_v23  ;;  %648 = vmatmul.mubr.bf16.gmra.mrb[12].mxu1 %v1468_v24 }
  0x40   : > { %537 = vmatprep.mubr.bf16.mxu0 %v1615_v2 }
  0x41   : > { %1371 = vmatpush3.bf16.msra.mxu1 %v1477_v39 }
  0x42   : > { %1372 = vmatprep.subr.bf16.mxu1 %v1478_v40 }
  0x45   : > { %1373 = vmatpush3.bf16.msra.mxu1 %v1478_v40 }
  0x47   : > { %538 = vmatmul.mubr.bf16.gmra.mrb[16].mxu0 %v1459_v25 }
  0x48   : > { %547 = vmatprep.mubr.bf16.mxu0 %v1615_v2 }
  0x4f   : > { %548 = vmatmul.mubr.bf16.gmra.mrb[20].mxu0 %v1460_v26 }
  0x50   : > { %557 = vmatprep.mubr.bf16.mxu0 %v1615_v2 }
  0x57   : > { %558 = vmatmul.mubr.bf16.gmra.mrb[24].mxu0 %v1461_v27 }
  0x58   : > { %567 = vmatprep.mubr.bf16.mxu0 %v1615_v2 }
  0x5f   : > { %568 = vmatmul.mubr.bf16.gmra.mrb[28].mxu0 %v1463_v28 }
  0x60   : > { %577 = vmatprep.mubr.bf16.mxu0 %v1615_v2 }
  0x67   : > { %578 = vmatmul.mubr.bf16.gmra.mrb[32].mxu0 %v1465_v29 }
  0x68   : > { %587 = vmatprep.mubr.bf16.mxu0 %v1615_v2 }
  0x6f   : > { %588 = vmatmul.mubr.bf16.gmra.mrb[36].mxu0 %v1467_v30 }
  0x70   : > { %597 = vmatprep.mubr.bf16.mxu0 %v1615_v2 }
  0x77   : > { %598 = vmatmul.mubr.bf16.gmra.mrb[40].mxu0 %v1469_v31 }
  0x78   : > { %607 = vmatprep.mubr.bf16.mxu0 %v1615_v2 }
  0x7f   : > { %608 = vmatmul.mubr.bf16.gmra.mrb[44].mxu0 %v1470_v32 }
  0xfa   : > { %v499_v46 = vpop.f32.mrb[0].mxu0  ;;  %v619_v47 = vpop.f32.mrb[0].mxu1 }
  0xfb   : > { %v1778_v48 = vadd.f32 %v499_v46, %v1775_v45  ;;  %v1780_v49 = vpop.f32.mrb[1].mxu0  ;;  %v1783_v50 = vadd.f32 %v619_v47, %v1775_v45  ;;  %v1785_v51 = vpop.f32.mrb[1].mxu1 }
  0xfc   : > { %v503_v52 = vpop.f32.mrb[2].mxu0  ;;  %v623_v53 = vpop.f32.mrb[2].mxu1 }
  0xfd   : > { %v1291_v54 = vmul.f32 -1.442695, %v1778_v48  ;;  %v1789_v55 = vadd.f32 %v503_v52, %v1775_v45  ;;  %v1791_v56 = vpop.f32.mrb[3].mxu0  ;;  %v1315_v57 = vmul.f32 -1.442695, %v1783_v50  ;;  %v1795_v58 = vadd.f32 %v623_v53, %v1775_v45  ;;  %v1797_v59 = vpop.f32.mrb[3].mxu1 }
  0xff   : > { %1479 = vpow2.f32 %v1291_v54  ;;  %v1292_v60 = vmul.f32 -1.442695, %v1789_v55  ;;  %v1316_v61 = vmul.f32 -1.442695, %v1795_v58 }
 0x100   : > { %1481 = vpow2.f32 %v1315_v57 }
 0x101   : > { %1483 = vpow2.f32 %v1292_v60 }
 0x102   : > { %v509_v62 = vpop.f32.mrb[4].mxu0  ;;  %1485 = vpow2.f32 %v1316_v61  ;;  %v629_v63 = vpop.f32.mrb[4].mxu1 }
 0x103   : > { %v1802_v0 = vadd.f32 %v509_v62, %v1775_v45  ;;  %v1804_v1 = vpop.f32.mrb[5].mxu0  ;;  %v1807_v2 = vadd.f32 %v629_v63, %v1775_v45  ;;  %v1809_v3 = vpop.f32.mrb[5].mxu1 }
 0x104   : > { %v513_v4 = vpop.f32.mrb[6].mxu0  ;;  %v633_v5 = vpop.f32.mrb[6].mxu1 }
 0x105   : > { %v1293_v6 = vmul.f32 -1.442695, %v1802_v0  ;;  %v1813_v7 = vadd.f32 %v513_v4, %v1775_v45  ;;  %v1815_v8 = vpop.f32.mrb[7].mxu0  ;;  %v1317_v9 = vmul.f32 -1.442695, %v1807_v2  ;;  %v1819_v10 = vadd.f32 %v633_v5, %v1775_v45  ;;  %v1821_v11 = vpop.f32.mrb[7].mxu1 }
 0x107   : > { %1487 = vpow2.f32 %v1293_v6  ;;  %v1294_v12 = vmul.f32 -1.442695, %v1813_v7  ;;  %v1318_v13 = vmul.f32 -1.442695, %v1819_v10 }
 0x108   : > { %1489 = vpow2.f32 %v1317_v9 }
 0x109   : > { %v1480_v14 = vpop.eup %1479  ;;  %1491 = vpow2.f32 %v1294_v12 }
 0x10a   : > { %v1482_v15 = vpop.eup %1481  ;;  %v754_v16 = vadd.f32 1.0, %v1480_v14  ;;  %v519_v17 = vpop.f32.mrb[8].mxu0  ;;  %1493 = vpow2.f32 %v1318_v13  ;;  %v622_v14 = vadd.f32 %v1785_v51, %v1851_v41 }
 0x10b   : > { %v639_v18 = vpop.f32.mrb[8].mxu1  ;;  %v1484_v19 = vpop.eup %1483  ;;  %v1826_v20 = vadd.f32 %v519_v17, %v1775_v45  ;;  %v778_v22 = vadd.f32 1.0, %v1482_v15 }
 0x10c   : > { %v1828_v21 = vpop.f32.mrb[9].mxu0  ;;  %v1831_v23 = vadd.f32 %v639_v18, %v1775_v45  ;;  %v1833_v24 = vpop.f32.mrb[9].mxu1  ;;  %1495 = vrcp.f32 %v754_v16  ;;  %v755_v26 = vadd.f32 1.0, %v1484_v19  ;;  %v502_v19 = vadd.f32 %v1780_v49, %v1851_v41 }
 0x10d   : > { %v1486_v25 = vpop.eup %1485  ;;  %v523_v27 = vpop.f32.mrb[10].mxu0  ;;  %v1295_v29 = vmul.f32 -1.442695, %v1826_v20  ;;  %1497 = vrcp.f32 %v778_v22 }
 0x10e   : > { %v643_v28 = vpop.f32.mrb[10].mxu1  ;;  %v1837_v30 = vadd.f32 %v523_v27, %v1775_v45  ;;  %v1839_v31 = vpop.f32.mrb[11].mxu0  ;;  %v779_v32 = vadd.f32 1.0, %v1486_v25  ;;  %1499 = vrcp.f32 %v755_v26  ;;  %v1319_v35 = vmul.f32 -1.442695, %v1831_v23 }
 0x10f   : > { %v1841_v33 = vpop.f32.mrb[11].mxu1  ;;  %v1846_v36 = vadd.f32 %v643_v28, %v1775_v45  ;;  %1501 = vpow2.f32 %v1295_v29  ;;  %v506_v26 = vadd.f32 %v1791_v56, %v1851_v41 }
 0x110   : > { %v1296_v37 = vmul.f32 -1.442695, %v1837_v30  ;;  %1503 = vrcp.f32 %v779_v32 }
 0x111   : > { %v1320_v38 = vmul.f32 -1.442695, %v1846_v36  ;;  %v1488_v39 = vpop.eup %1487 }
 0x112   : > { %1505 = vpow2.f32 %v1296_v37  ;;  %v1490_v40 = vpop.eup %1489  ;;  %v756_v43 = vadd.f32 1.0, %v1488_v39  ;;  %v529_v42 = vpop.f32.mrb[12].mxu0 }
 0x113   : > { %1507 = vpow2.f32 %v1319_v35  ;;  %v649_v46 = vpop.f32.mrb[12].mxu1  ;;  %v1492_v47 = vpop.eup %1491  ;;  %v1854_v52 = vadd.f32 %v529_v42, %v1775_v45  ;;  %v780_v54 = vadd.f32 1.0, %v1490_v40 }
 0x114   : > { %v1856_v53 = vpop.f32.mrb[13].mxu0  ;;  %1509 = vpow2.f32 %v1320_v38  ;;  %v1859_v57 = vadd.f32 %v649_v46, %v1775_v45  ;;  %v1861_v60 = vpop.f32.mrb[13].mxu1  ;;  %v757_v44 = vadd.f32 1.0, %v1492_v47 }
 0x115   : > { %v1494_v61 = vpop.eup %1493  ;;  %1511 = vrcp.f32 %v756_v43  ;;  %v533_v62 = vpop.f32.mrb[14].mxu0  ;;  %v1297_v4 = vmul.f32 -1.442695, %v1854_v52 }
 0x116   : > { %v653_v63 = vpop.f32.mrb[14].mxu1  ;;  %v1865_v5 = vadd.f32 %v533_v62, %v1775_v45  ;;  %v1867_v6 = vpop.f32.mrb[15].mxu0  ;;  %1513 = vrcp.f32 %v780_v54  ;;  %v781_v9 = vadd.f32 1.0, %v1494_v61  ;;  %v1321_v15 = vmul.f32 -1.442695, %v1859_v57 }
 0x117   : > { %v1869_v12 = vpop.f32.mrb[15].mxu1  ;;  %v1496_v13 = vpop.eup %1495  ;;  %1515 = vrcp.f32 %v757_v44  ;;  %v1875_v16 = vadd.f32 %v653_v63, %v1775_v45  ;;  %v632_v63 = vadd.f32 %v1809_v3, %v1851_v41 }
 0x118   : > { %v1498_v17 = vpop.eup %1497  ;;  %v850_v18 = vmul.f32 %v1496_v13, %v1778_v48  ;;  %1517 = vpow2.f32 %v1297_v4  ;;  %v1298_v22 = vmul.f32 -1.442695, %v1865_v5  ;;  %v626_v48 = vadd.f32 %v1797_v59, %v1851_v41 }
 0x119   : > { %v1500_v25 = vpop.eup %1499  ;;  %v874_v51 = vmul.f32 %v1498_v17, %v1783_v50  ;;  %1519 = vrcp.f32 %v781_v9  ;;  %v1322_v27 = vmul.f32 -1.442695, %v1875_v16  ;;  %v512_v59 = vadd.f32 %v1804_v1, %v1851_v41 }
 0x11a   : > { %v1502_v28 = vpop.eup %1501  ;;  %v882_v29 = vmul.f32 %v850_v18, %v502_v19  ;;  %v851_v32 = vmul.f32 %v1500_v25, %v1789_v55  ;;  %1521 = vpow2.f32 %v1298_v22  ;;  %v539_v35 = vpop.f32.mrb[16].mxu0  ;;  %v516_v18 = vadd.f32 %v1815_v8, %v1851_v41 }
 0x11b   : > { %v1504_v49 = vpop.eup %1503  ;;  %v758_v34 = vadd.f32 1.0, %v1502_v28  ;;  %v1888_v37 = vmul.f32 %v874_v51, %v622_v14  ;;  %1523 = vpow2.f32 %v1321_v15  ;;  %v1891_v50 = vadd.f32 %v539_v35, %v1775_v45  ;;  %v1893_v39 = vpop.f32.mrb[17].mxu0 }
 0x11c   : > { %v1506_v56 = vpop.eup %1505  ;;  %v883_v38 = vmul.f32 %v851_v32, %v506_v26  ;;  %v875_v40 = vmul.f32 %v1504_v49, %v1795_v58  ;;  %1525 = vpow2.f32 %v1322_v27  ;;  %v543_v42 = vpop.f32.mrb[18].mxu0 }
 0x11d   : > { %v1508_v55 = vpop.eup %1507  ;;  %1527 = vrcp.f32 %v758_v34  ;;  %v759_v43 = vadd.f32 1.0, %v1506_v56  ;;  %v1299_v47 = vmul.f32 -1.442695, %v1891_v50  ;;  %v1900_v54 = vadd.f32 %v543_v42, %v1775_v45  ;;  %v1902_v61 = vpop.f32.mrb[19].mxu0 }
 0x11e   : > { %v1510_v46 = vpop.eup %1509  ;;  %v914_v44 = vpack.c.bf16 %v883_v38, %v882_v29  ;;  %v1904_v62 = vmul.f32 %v875_v40, %v626_v48  ;;  %v782_v1 = vadd.f32 1.0, %v1508_v55 }
 0x11f   : > { %v1512_v58 = vpop.eup %1511  ;;  %1529 = vrcp.f32 %v759_v43  ;;  %v783_v4 = vadd.f32 1.0, %v1510_v46  ;;  %v1300_v14 = vmul.f32 -1.442695, %v1900_v54  ;;  %v522_v43 = vadd.f32 %v1828_v21, %v1851_v41 }
 0x120   : > { %v1514_v9 = vpop.eup %1513  ;;  %v852_v13 = vmul.f32 %v1512_v58, %v1802_v0  ;;  %1531 = vpow2.f32 %v1299_v47  ;;  %1374 = vmatprep.mubr.bf16.mxu1 %v914_v44  ;;  %v926_v15 = vpack.c.bf16 %v1904_v62, %v1888_v37  ;;  %v636_v0 = vadd.f32 %v1821_v11, %v1851_v41 }
 0x121   : > { %v1516_v17 = vpop.eup %1515  ;;  %v876_v19 = vmul.f32 %v1514_v9, %v1807_v2  ;;  %1533 = vrcp.f32 %v782_v1  ;;  %v526_v9 = vadd.f32 %v1839_v31, %v1851_v41  ;;  %v646_v31 = vadd.f32 %v1841_v33, %v1851_v41 }
 0x122   : > { %v1518_v3 = vpop.eup %1517  ;;  %v884_v22 = vmul.f32 %v852_v13, %v512_v59  ;;  %v853_v25 = vmul.f32 %v1516_v17, %v1813_v7  ;;  %1535 = vpow2.f32 %v1300_v14  ;;  %v549_v27 = vpop.f32.mrb[20].mxu0 }
 0x123   : > { %v1520_v26 = vpop.eup %1519  ;;  %v760_v51 = vadd.f32 1.0, %v1518_v3  ;;  %v1918_v28 = vmul.f32 %v876_v19, %v632_v63  ;;  %1537 = vrcp.f32 %v783_v4  ;;  %v1921_v8 = vadd.f32 %v549_v27, %v1775_v45  ;;  %v1923_v2 = vpop.f32.mrb[21].mxu0 }
 0x124   : > { %v1522_v29 = vpop.eup %1521  ;;  %v885_v32 = vmul.f32 %v853_v25, %v516_v18  ;;  %v877_v48 = vmul.f32 %v1520_v26, %v1819_v10  ;;  %v553_v34 = vpop.f32.mrb[22].mxu0  ;;  %v642_v63 = vadd.f32 %v1833_v24, %v1851_v41 }
 0x125   : > { %v1524_v7 = vpop.eup %1523  ;;  %1539 = vrcp.f32 %v760_v51  ;;  %v761_v49 = vadd.f32 1.0, %v1522_v29  ;;  %v1301_v56 = vmul.f32 -1.442695, %v1921_v8  ;;  %v1928_v38 = vadd.f32 %v553_v34, %v1775_v45  ;;  %v1930_v40 = vpop.f32.mrb[23].mxu0 }
 0x126   : > { %v1526_v11 = vpop.eup %1525  ;;  %v915_v35 = vpack.c.bf16 %v885_v32, %v884_v22  ;;  %v1932_v55 = vmul.f32 %v877_v48, %v636_v0  ;;  %v784_v10 = vadd.f32 1.0, %v1524_v7  ;;  %v532_v7 = vadd.f32 %v1856_v53, %v1851_v41 }
 0x127   : > { %v1528_v59 = vpop.eup %1527  ;;  %1541 = vrcp.f32 %v761_v49  ;;  %v785_v42 = vadd.f32 1.0, %v1526_v11  ;;  %v1302_v47 = vmul.f32 -1.442695, %v1928_v38  ;;  %v652_v11 = vadd.f32 %v1861_v60, %v1851_v41 }
 0x128   : > { %v854_v46 = vmul.f32 %v1528_v59, %v1826_v20  ;;  %1543 = vpow2.f32 %v1301_v56  ;;  %1375 = vmatmul.mubr.bf16.vlgmr.msra.gmra.mrb[16].mxu1 %v915_v35  ;;  %v927_v44 = vpack.c.bf16 %v1932_v55, %v1918_v28 }
 0x129   : > { %v1530_v58 = vpop.eup %1529  ;;  %1545 = vrcp.f32 %v784_v10 }
 0x12a   : > { %v1532_v1 = vpop.eup %1531  ;;  %v886_v4 = vmul.f32 %v854_v46, %v522_v43  ;;  %v855_v21 = vmul.f32 %v1530_v58, %v1837_v30  ;;  %1547 = vpow2.f32 %v1302_v47  ;;  %v559_v14 = vpop.f32.mrb[24].mxu0 }
 0x12b   : > { %v1534_v20 = vpop.eup %1533  ;;  %v762_v13 = vadd.f32 1.0, %v1532_v1  ;;  %1549 = vrcp.f32 %v785_v42  ;;  %v1946_v19 = vadd.f32 %v559_v14, %v1775_v45  ;;  %v1948_v3 = vpop.f32.mrb[25].mxu0  ;;  %v656_v1 = vadd.f32 %v1869_v12, %v1851_v41 }
 0x12c   : > { %v1536_v17 = vpop.eup %1535  ;;  %v887_v18 = vmul.f32 %v855_v21, %v526_v9  ;;  %v878_v24 = vmul.f32 %v1534_v20, %v1831_v23  ;;  %v563_v25 = vpop.f32.mrb[26].mxu0 }
 0x12d   : > { %v1538_v22 = vpop.eup %1537  ;;  %1551 = vrcp.f32 %v762_v13  ;;  %v763_v30 = vadd.f32 1.0, %v1536_v17  ;;  %v1303_v0 = vmul.f32 -1.442695, %v1946_v19  ;;  %v1955_v26 = vadd.f32 %v563_v25, %v1775_v45  ;;  %v1957_v51 = vpop.f32.mrb[27].mxu0 }
 0x12e   : > { %v916_v27 = vpack.c.bf16 %v887_v18, %v886_v4  ;;  %v1959_v29 = vmul.f32 %v878_v24, %v642_v63  ;;  %v879_v23 = vmul.f32 %v1538_v22, %v1846_v36  ;;  %v536_v36 = vadd.f32 %v1867_v6, %v1851_v41 }
 0x12f   : > { %v1540_v32 = vpop.eup %1539  ;;  %1553 = vrcp.f32 %v763_v30  ;;  %v1304_v33 = vmul.f32 -1.442695, %v1955_v26  ;;  %v542_v18 = vadd.f32 %v1893_v39, %v1851_v41 }
 0x130   : > { %v856_v48 = vmul.f32 %v1540_v32, %v1854_v52  ;;  %1555 = vpow2.f32 %v1303_v0  ;;  %1378 = vmatprep.mubr.bf16.mxu1 %v916_v27  ;;  %v1966_v34 = vmul.f32 %v879_v23, %v646_v31  ;;  %v546_v0 = vadd.f32 %v1902_v61, %v1851_v41 }
 0x131   : > { %v1542_v49 = vpop.eup %1541  ;;  %1557 = vpow2.f32 %v1304_v33 }
 0x132   : > { %v1544_v35 = vpop.eup %1543  ;;  %v888_v56 = vmul.f32 %v856_v48, %v532_v7  ;;  %v857_v59 = vmul.f32 %v1542_v49, %v1865_v5  ;;  %v569_v43 = vpop.f32.mrb[28].mxu0  ;;  %v928_v10 = vpack.c.bf16 %v1966_v34, %v1959_v29 }
 0x133   : > { %v1546_v52 = vpop.eup %1545  ;;  %v764_v53 = vadd.f32 1.0, %v1544_v35  ;;  %v1976_v47 = vadd.f32 %v569_v43, %v1775_v45  ;;  %v1978_v60 = vpop.f32.mrb[29].mxu0 }
 0x134   : > { %v1548_v42 = vpop.eup %1547  ;;  %v889_v46 = vmul.f32 %v857_v59, %v536_v36  ;;  %v880_v58 = vmul.f32 %v1546_v52, %v1859_v57  ;;  %v573_v6 = vpop.f32.mrb[30].mxu0  ;;  %v552_v59 = vadd.f32 %v1923_v2, %v1851_v41 }
 0x135   : > { %v1550_v5 = vpop.eup %1549  ;;  %1559 = vrcp.f32 %v764_v53  ;;  %v765_v63 = vadd.f32 1.0, %v1548_v42  ;;  %v1305_v4 = vmul.f32 -1.442695, %v1976_v47  ;;  %v1985_v21 = vadd.f32 %v573_v6, %v1775_v45  ;;  %v1987_v9 = vpop.f32.mrb[31].mxu0 }
 0x136   : > { %v917_v20 = vpack.c.bf16 %v889_v46, %v888_v56  ;;  %v1989_v13 = vmul.f32 %v880_v58, %v652_v11  ;;  %v881_v57 = vmul.f32 %v1550_v5, %v1875_v16  ;;  %v556_v46 = vadd.f32 %v1930_v40, %v1851_v41 }
 0x137   : > { %v1552_v14 = vpop.eup %1551  ;;  %1561 = vrcp.f32 %v765_v63  ;;  %v1306_v12 = vmul.f32 -1.442695, %v1985_v21 }
 0x138   : > { %v858_v17 = vmul.f32 %v1552_v14, %v1891_v50  ;;  %1563 = vpow2.f32 %v1305_v4  ;;  %1379 = vmatmul.mubr.bf16.gmra.mrb[20].mxu1 %v917_v20  ;;  %v1996_v22 = vmul.f32 %v881_v57, %v656_v1 }
 0x139   : > { %v1554_v24 = vpop.eup %1553  ;;  %1565 = vpow2.f32 %v1306_v12 }
 0x13a   : > { %v1556_v30 = vpop.eup %1555  ;;  %v890_v25 = vmul.f32 %v858_v17, %v542_v18  ;;  %v859_v31 = vmul.f32 %v1554_v24, %v1900_v54  ;;  %v579_v50 = vpop.f32.mrb[32].mxu0  ;;  %v929_v39 = vpack.c.bf16 %v1996_v22, %v1989_v13  ;;  %v562_v18 = vadd.f32 %v1948_v3, %v1851_v41 }
 0x13b   : > { %v766_v16 = vadd.f32 1.0, %v1556_v30  ;;  %v1558_v27 = vpop.eup %1557  ;;  %v2004_v23 = vadd.f32 %v579_v50, %v1775_v45  ;;  %v2006_v48 = vpop.f32.mrb[33].mxu0 }
 0x13c   : > { %v891_v32 = vmul.f32 %v859_v31, %v546_v0  ;;  %v767_v7 = vadd.f32 1.0, %v1558_v27  ;;  %v583_v33 = vpop.f32.mrb[34].mxu0  ;;  %v566_v0 = vadd.f32 %v1957_v51, %v1851_v41 }
 0x13d   : > { %1567 = vrcp.f32 %v766_v16  ;;  %v1307_v54 = vmul.f32 -1.442695, %v2004_v23  ;;  %v2010_v61 = vadd.f32 %v583_v33, %v1775_v45  ;;  %v2012_v49 = vpop.f32.mrb[35].mxu0 }
 0x13e   : > { %v918_v11 = vpack.c.bf16 %v891_v32, %v890_v25  ;;  %1569 = vrcp.f32 %v767_v7 }
 0x13f   : > { %v1560_v35 = vpop.eup %1559  ;;  %1571 = vpow2.f32 %v1307_v54  ;;  %v1308_v36 = vmul.f32 -1.442695, %v2010_v61 }
 0x140   : > { %v860_v56 = vmul.f32 %v1560_v35, %v1921_v8  ;;  %1382 = vmatprep.mubr.bf16.mxu1 %v918_v11 }
 0x141   : > { %v1562_v52 = vpop.eup %1561  ;;  %1573 = vpow2.f32 %v1308_v36 }
 0x142   : > { %v1564_v53 = vpop.eup %1563  ;;  %v892_v43 = vmul.f32 %v860_v56, %v552_v59  ;;  %v861_v42 = vmul.f32 %v1562_v52, %v1928_v38  ;;  %v589_v5 = vpop.f32.mrb[36].mxu0  ;;  %v572_v59 = vadd.f32 %v1978_v60, %v1851_v41 }
 0x143   : > { %v768_v58 = vadd.f32 1.0, %v1564_v53  ;;  %v1566_v63 = vpop.eup %1565  ;;  %v2022_v6 = vadd.f32 %v589_v5, %v1775_v45  ;;  %v2024_v2 = vpop.f32.mrb[37].mxu0 }
 0x144   : > { %v893_v8 = vmul.f32 %v861_v42, %v556_v46  ;;  %v769_v1 = vadd.f32 1.0, %v1566_v63  ;;  %v593_v4 = vpop.f32.mrb[38].mxu0  ;;  %v576_v46 = vadd.f32 %v1987_v9, %v1851_v41 }
 0x145   : > { %1575 = vrcp.f32 %v768_v58  ;;  %v1309_v20 = vmul.f32 -1.442695, %v2022_v6  ;;  %v2028_v38 = vadd.f32 %v593_v4, %v1775_v45  ;;  %v2030_v14 = vpop.f32.mrb[39].mxu0 }
 0x146   : > { %v919_v40 = vpack.c.bf16 %v893_v8, %v892_v43  ;;  %1577 = vrcp.f32 %v769_v1 }
 0x147   : > { %v1568_v57 = vpop.eup %1567  ;;  %1579 = vpow2.f32 %v1309_v20  ;;  %v1310_v12 = vmul.f32 -1.442695, %v2028_v38 }
 0x148   : > { %v862_v17 = vmul.f32 %v1568_v57, %v1946_v19  ;;  %1383 = vmatmul.mubr.bf16.gmra.mrb[24].mxu1 %v919_v40  ;;  %v1570_v24 = vpop.eup %1569 }
 0x149   : > { %v1572_v30 = vpop.eup %1571  ;;  %v863_v31 = vmul.f32 %v1570_v24, %v1955_v26  ;;  %1581 = vpow2.f32 %v1310_v12 }
 0x14a   : > { %v894_v25 = vmul.f32 %v862_v17, %v562_v18  ;;  %v770_v16 = vadd.f32 1.0, %v1572_v30  ;;  %v599_v50 = vpop.f32.mrb[40].mxu0  ;;  %v582_v18 = vadd.f32 %v2006_v48, %v1851_v41 }
 0x14b   : > { %v1574_v27 = vpop.eup %1573  ;;  %v895_v19 = vmul.f32 %v863_v31, %v566_v0  ;;  %v2040_v32 = vadd.f32 %v599_v50, %v1775_v45  ;;  %v2042_v3 = vpop.f32.mrb[41].mxu0 }
 0x14c   : > { %1583 = vrcp.f32 %v770_v16  ;;  %v771_v7 = vadd.f32 1.0, %v1574_v27  ;;  %v603_v33 = vpop.f32.mrb[42].mxu0 }
 0x14d   : > { %v1311_v54 = vmul.f32 -1.442695, %v2040_v32  ;;  %v2046_v26 = vadd.f32 %v603_v33, %v1775_v45  ;;  %v2048_v11 = vpop.f32.mrb[43].mxu0  ;;  %v920_v51 = vpack.c.bf16 %v895_v19, %v894_v25 }
 0x14e   : > { %1585 = vrcp.f32 %v771_v7  ;;  %v592_v7 = vadd.f32 %v2024_v2, %v1851_v41  ;;  %v602_v2 = vadd.f32 %v2042_v3, %v1851_v41 }
 0x14f   : > { %v1576_v35 = vpop.eup %1575  ;;  %1587 = vpow2.f32 %v1311_v54  ;;  %v1312_v36 = vmul.f32 -1.442695, %v2046_v26  ;;  %1386 = vmatprep.mubr.bf16.mxu1 %v920_v51  ;;  %v596_v51 = vadd.f32 %v2030_v14, %v1851_v41  ;;  %v606_v14 = vadd.f32 %v2048_v11, %v1851_v41 }
 0x150   : > { %v864_v56 = vmul.f32 %v1576_v35, %v1976_v47  ;;  %v1578_v52 = vpop.eup %1577 }
 0x151   : > { %v1580_v53 = vpop.eup %1579  ;;  %v865_v42 = vmul.f32 %v1578_v52, %v1985_v21  ;;  %1589 = vpow2.f32 %v1312_v36 }
 0x152   : > { %v896_v43 = vmul.f32 %v864_v56, %v572_v59  ;;  %v772_v58 = vadd.f32 1.0, %v1580_v53  ;;  %v609_v5 = vpop.f32.mrb[44].mxu0 }
 0x153   : > { %v1582_v63 = vpop.eup %1581  ;;  %v897_v47 = vmul.f32 %v865_v42, %v576_v46  ;;  %v610_v8 = vadd.f32 %v609_v5, %v1775_v45  ;;  %v611_v60 = vpop.f32.mrb[45].mxu0 }
 0x154   : > { %1591 = vrcp.f32 %v772_v58  ;;  %v773_v1 = vadd.f32 1.0, %v1582_v63  ;;  %v613_v4 = vpop.f32.mrb[46].mxu0 }
 0x155   : > { %v1313_v20 = vmul.f32 -1.442695, %v610_v8  ;;  %v614_v40 = vadd.f32 %v613_v4, %v1775_v45  ;;  %v615_v57 = vpop.f32.mrb[47].mxu0  ;;  %v921_v17 = vpack.c.bf16 %v897_v47, %v896_v43  ;;  %v586_v45 = vadd.f32 %v2012_v49, %v1851_v41 }
 0x156   : > { %v1584_v21 = vpop.eup %1583  ;;  %1593 = vrcp.f32 %v773_v1  ;;  %v612_v47 = vadd.f32 %v611_v60, %v1851_v41  ;;  %v616_v3 = vadd.f32 %v615_v57, %v1851_v41  ;;  %v2095_v41 = vld [vmem:[%s2173_s4] ss:$0 sm:$0xff] }
 0x157   : > { %v866_v9 = vmul.f32 %v1584_v21, %v2004_v23  ;;  %1595 = vpow2.f32 %v1313_v20  ;;  %v1314_v12 = vmul.f32 -1.442695, %v614_v40  ;;  %1387 = vmatmul.mubr.bf16.gmra.mrb[28].mxu1 %v921_v17 }
 0x158   : > { %v1586_v24 = vpop.eup %1585 }
 0x159   : > { %v1588_v30 = vpop.eup %1587  ;;  %v898_v25 = vmul.f32 %v866_v9, %v582_v18  ;;  %v867_v31 = vmul.f32 %v1586_v24, %v2010_v61  ;;  %1597 = vpow2.f32 %v1314_v12 }
 0x15a   : > { %v774_v0 = vadd.f32 1.0, %v1588_v30 }
 0x15b   : > { %v1590_v16 = vpop.eup %1589  ;;  %v899_v50 = vmul.f32 %v867_v31, %v586_v45 }
 0x15c   : > { %1599 = vrcp.f32 %v774_v0  ;;  %v775_v23 = vadd.f32 1.0, %v1590_v16 }
 0x15d   : > { %v922_v27 = vpack.c.bf16 %v899_v50, %v898_v25 }
 0x15e   : > { %v1592_v19 = vpop.eup %1591  ;;  %1601 = vrcp.f32 %v775_v23 }
 0x15f   : > { %v868_v48 = vmul.f32 %v1592_v19, %v2022_v6  ;;  %1390 = vmatprep.mubr.bf16.mxu1 %v922_v27 }
 0x160   : > { %v1594_v33 = vpop.eup %1593 }
 0x161   : > { %v1596_v61 = vpop.eup %1595  ;;  %v900_v54 = vmul.f32 %v868_v48, %v592_v7  ;;  %v869_v49 = vmul.f32 %v1594_v33, %v2028_v38 }
 0x162   : > { %v776_v35 = vadd.f32 1.0, %v1596_v61 }
 0x163   : > { %v1598_v56 = vpop.eup %1597  ;;  %v901_v59 = vmul.f32 %v869_v49, %v596_v51 }
 0x164   : > { %1603 = vrcp.f32 %v776_v35  ;;  %v777_v36 = vadd.f32 1.0, %v1598_v56 }
 0x165   : > { %v923_v52 = vpack.c.bf16 %v901_v59, %v900_v54 }
 0x166   : > { %v1600_v53 = vpop.eup %1599  ;;  %1605 = vrcp.f32 %v777_v36 }
 0x167   : > { %v870_v6 = vmul.f32 %v1600_v53, %v2040_v32  ;;  %1391 = vmatmul.mubr.bf16.gmra.mrb[32].mxu1 %v923_v52 }
 0x168   : > { %v1602_v43 = vpop.eup %1601 }
 0x169   : > { %v902_v42 = vmul.f32 %v870_v6, %v602_v2  ;;  %v871_v38 = vmul.f32 %v1602_v43, %v2046_v26 }
 0x16b   : > { %v903_v46 = vmul.f32 %v871_v38, %v606_v14 }
 0x16d   : > { %v924_v58 = vpack.c.bf16 %v903_v46, %v902_v42 }
 0x16e   : > { %v1604_v5 = vpop.eup %1603 }
 0x16f   : > { %v872_v63 = vmul.f32 %v1604_v5, %v610_v8  ;;  %1394 = vmatprep.mubr.bf16.mxu1 %v924_v58 }
 0x170   : > { %v1606_v32 = vpop.eup %1605 }
 0x171   : > { %v904_v1 = vmul.f32 %v872_v63, %v612_v47  ;;  %v873_v4 = vmul.f32 %v1606_v32, %v614_v40 }
 0x173   : > { %v905_v20 = vmul.f32 %v873_v4, %v616_v3 }
 0x175   : > { %v925_v17 = vpack.c.bf16 %v905_v20, %v904_v1 }
 0x177   : > { %1395 = vmatmul.mubr.bf16.gmra.mrb[36].mxu1 %v925_v17 }
 0x178   : > { %1398 = vmatprep.mubr.bf16.mxu1 %v926_v15 }
 0x17f   : > { %1399 = vmatmul.mubr.bf16.gmra.mrb[40].mxu1 %v927_v44 }
 0x180   : > { %1402 = vmatprep.mubr.bf16.mxu1 %v928_v10 }
 0x187   : > { %1403 = vmatmul.mubr.bf16.gmra.mrb[44].mxu1 %v929_v39 }
 0x1fb   : > { %v1376_v37 = vpop.f32.mrb[16].mxu1 }
 0x1fc   : > { %v1044_v62 = vadd.f32 %v1376_v37, %v2095_v41  ;;  %v1035_v15 = vpop.f32.mrb[17].mxu1 }
 0x1fd   : > { %v1036_v28 = vadd.f32 %v2095_v41, %v1035_v15  ;;  %v1377_v55 = vpop.f32.mrb[18].mxu1 }
 0x1fe   : > { %1164 = vst [vmem:[%s2100_s9 + $0x10] sm:$0xff] %v1044_v62  ;;  %v1047_v44 = vadd.f32 %v1377_v55, %v2095_v41  ;;  %v1038_v29 = vpop.f32.mrb[19].mxu1 }
 0x1ff   : > { %1162 = vst [vmem:[%s2100_s9] sm:$0xff] %v1036_v28  ;;  %v1039_v34 = vadd.f32 %v2095_v41, %v1038_v29 }
 0x200   : > { %1165 = vst [vmem:[%s2100_s9 + $0x18] sm:$0xff] %v1047_v44 }
 0x201   : > { %1163 = vst [vmem:[%s2100_s9 + $0x8] sm:$0xff] %v1039_v34 }
 0x20b   : > { %v1380_v10 = vpop.f32.mrb[20].mxu1 }
 0x20c   : > { %v1060_v13 = vadd.f32 %v1380_v10, %v2095_v41  ;;  %v1051_v22 = vpop.f32.mrb[21].mxu1 }
 0x20d   : > { %v1052_v39 = vadd.f32 %v2095_v41, %v1051_v22  ;;  %v1381_v26 = vpop.f32.mrb[22].mxu1 }
 0x20e   : > { %1168 = vst [vmem:[%s2100_s9 + $0x30] sm:$0xff] %v1060_v13  ;;  %v1063_v11 = vadd.f32 %v1381_v26, %v2095_v41  ;;  %v1054_v8 = vpop.f32.mrb[23].mxu1 }
 0x20f   : > { %1166 = vst [vmem:[%s2100_s9 + $0x20] sm:$0xff] %v1052_v39  ;;  %v1055_v60 = vadd.f32 %v2095_v41, %v1054_v8 }
 0x210   : > { %1169 = vst [vmem:[%s2100_s9 + $0x38] sm:$0xff] %v1063_v11 }
 0x211   : > { %1167 = vst [vmem:[%s2100_s9 + $0x28] sm:$0xff] %v1055_v60 }
 0x21b   : > { %v1384_v40 = vpop.f32.mrb[24].mxu1 }
 0x21c   : > { %v1076_v57 = vadd.f32 %v1384_v40, %v2095_v41  ;;  %v1067_v21 = vpop.f32.mrb[25].mxu1 }
 0x21d   : > { %v1068_v9 = vadd.f32 %v2095_v41, %v1067_v21  ;;  %v1385_v18 = vpop.f32.mrb[26].mxu1 }
 0x21e   : > { %1172 = vst [vmem:[%s2100_s9 + $0x50] sm:$0xff] %v1076_v57  ;;  %v1079_v12 = vadd.f32 %v1385_v18, %v2095_v41  ;;  %v1070_v24 = vpop.f32.mrb[27].mxu1 }
 0x21f   : > { %1170 = vst [vmem:[%s2100_s9 + $0x40] sm:$0xff] %v1068_v9  ;;  %v1071_v30 = vadd.f32 %v2095_v41, %v1070_v24 }
 0x220   : > { %1173 = vst [vmem:[%s2100_s9 + $0x58] sm:$0xff] %v1079_v12 }
 0x221   : > { %1171 = vst [vmem:[%s2100_s9 + $0x48] sm:$0xff] %v1071_v30 }
 0x22a   : > { %v1388_v25 = vpop.f32.mrb[28].mxu1 }
 0x22b   : > { %v1092_v31 = vadd.f32 %v1388_v25, %v2095_v41  ;;  %v1083_v45 = vpop.f32.mrb[29].mxu1 }
 0x22c   : > { %v1084_v0 = vadd.f32 %v2095_v41, %v1083_v45  ;;  %v1389_v16 = vpop.f32.mrb[30].mxu1 }
 0x22d   : > { %1176 = vst [vmem:[%s2100_s9 + $0x70] sm:$0xff] %v1092_v31  ;;  %v1095_v50 = vadd.f32 %v1389_v16, %v2095_v41  ;;  %v1086_v23 = vpop.f32.mrb[31].mxu1 }
 0x22e   : > { %1174 = vst [vmem:[%s2100_s9 + $0x60] sm:$0xff] %v1084_v0  ;;  %v1087_v27 = vadd.f32 %v2095_v41, %v1086_v23 }
 0x22f   : > { %1177 = vst [vmem:[%s2100_s9 + $0x78] sm:$0xff] %v1095_v50 }
 0x230   : > { %1175 = vst [vmem:[%s2100_s9 + $0x68] sm:$0xff] %v1087_v27 }
 0x23a   : > { %v1392_v19 = vpop.f32.mrb[32].mxu1 }
 0x23b   : > { %v1108_v48 = vadd.f32 %v1392_v19, %v2095_v41  ;;  %v1099_v7 = vpop.f32.mrb[33].mxu1 }
 0x23c   : > { %v1100_v33 = vadd.f32 %v2095_v41, %v1099_v7  ;;  %v1393_v61 = vpop.f32.mrb[34].mxu1 }
 0x23d   : > { %1180 = vst [vmem:[%s2100_s9 + $0x90] sm:$0xff] %v1108_v48  ;;  %v1111_v54 = vadd.f32 %v1393_v61, %v2095_v41  ;;  %v1102_v49 = vpop.f32.mrb[35].mxu1 }
 0x23e   : > { %1178 = vst [vmem:[%s2100_s9 + $0x80] sm:$0xff] %v1100_v33  ;;  %v1103_v51 = vadd.f32 %v2095_v41, %v1102_v49 }
 0x23f   : > { %1181 = vst [vmem:[%s2100_s9 + $0x98] sm:$0xff] %v1111_v54 }
 0x240   : > { %1179 = vst [vmem:[%s2100_s9 + $0x88] sm:$0xff] %v1103_v51 }
 0x24a   : > { %v1396_v35 = vpop.f32.mrb[36].mxu1 }
 0x24b   : > { %v1124_v56 = vadd.f32 %v1396_v35, %v2095_v41  ;;  %v1115_v59 = vpop.f32.mrb[37].mxu1 }
 0x24c   : > { %v1116_v36 = vadd.f32 %v2095_v41, %v1115_v59  ;;  %v1397_v52 = vpop.f32.mrb[38].mxu1 }
 0x24d   : > { %1184 = vst [vmem:[%s2100_s9 + $0xb0] sm:$0xff] %v1124_v56  ;;  %v1127_v53 = vadd.f32 %v1397_v52, %v2095_v41  ;;  %v1118_v6 = vpop.f32.mrb[39].mxu1 }
 0x24e   : > { %1182 = vst [vmem:[%s2100_s9 + $0xa0] sm:$0xff] %v1116_v36  ;;  %v1119_v2 = vadd.f32 %v2095_v41, %v1118_v6 }
 0x24f   : > { %1185 = vst [vmem:[%s2100_s9 + $0xb8] sm:$0xff] %v1127_v53 }
 0x250   : > { %1183 = vst [vmem:[%s2100_s9 + $0xa8] sm:$0xff] %v1119_v2 }
 0x252   : > { %v1400_v43 = vpop.f32.mrb[40].mxu1 }
 0x253   : > { %v1140_v42 = vadd.f32 %v1400_v43, %v2095_v41  ;;  %v1131_v38 = vpop.f32.mrb[41].mxu1 }
 0x254   : > { %v1132_v14 = vadd.f32 %v2095_v41, %v1131_v38  ;;  %v1401_v46 = vpop.f32.mrb[42].mxu1 }
 0x255   : > { %1188 = vst [vmem:[%s2100_s9 + $0xd0] sm:$0xff] %v1140_v42  ;;  %v1143_v58 = vadd.f32 %v1401_v46, %v2095_v41  ;;  %v1134_v5 = vpop.f32.mrb[43].mxu1 }
 0x256   : > { %1186 = vst [vmem:[%s2100_s9 + $0xc0] sm:$0xff] %v1132_v14  ;;  %v1135_v63 = vadd.f32 %v2095_v41, %v1134_v5 }
 0x257   : > { %1189 = vst [vmem:[%s2100_s9 + $0xd8] sm:$0xff] %v1143_v58 }
 0x258   : > { %1187 = vst [vmem:[%s2100_s9 + $0xc8] sm:$0xff] %v1135_v63 }
 0x25a   : > { %v1404_v47 = vpop.f32.mrb[44].mxu1 }
 0x25b   : > { %v1156_v32 = vadd.f32 %v1404_v47, %v2095_v41  ;;  %v1147_v1 = vpop.f32.mrb[45].mxu1 }
 0x25c   : > { %v1148_v4 = vadd.f32 %v2095_v41, %v1147_v1  ;;  %v1405_v3 = vpop.f32.mrb[46].mxu1 }
 0x25d   : > { %1192 = vst [vmem:[%s2100_s9 + $0xf0] sm:$0xff] %v1156_v32  ;;  %v1159_v20 = vadd.f32 %v1405_v3, %v2095_v41  ;;  %v1150_v17 = vpop.f32.mrb[47].mxu1 }
 0x25e   : > { %1190 = vst [vmem:[%s2100_s9 + $0xe0] sm:$0xff] %v1148_v4  ;;  %v1151_v37 = vadd.f32 %v2095_v41, %v1150_v17 }
 0x25f   : > { %1193 = vst [vmem:[%s2100_s9 + $0xf8] sm:$0xff] %v1159_v20 }
 0x260   : > { %1191 = vst [vmem:[%s2100_s9 + $0xe8] sm:$0xff] %v1151_v37 }
 0x261 PF: > { %s15_s18 = sadd.s32 1, %s1613_s18  }
 0x262   : > { %p12_p4 = scmp.ge.s32.totalorder %s15_s18, 4  }
 0x264   :  { %14 = sbr.rel (!%p12_p4) target bundleno = 1 (0x1), region = 70 }

</bundles_post_ra>
